<compile_context>
chip_gen: v5e
topology: v5e:2x2
jax: 0.10.0
libtpu: 0.0.40
codegen_flags: <defaults>
</compile_context>

<pallas_src>
import jax
import jax.numpy as jnp
from jax import lax
from jax.experimental import pallas as pl
from jax.experimental.pallas import tpu as pltpu


def _round_up(n, m):
    return ((n + m - 1) // m) * m


def rnn_kernel(x_ref, wih_ref, whh_ref, b_ref, wfc_ref, bfc_ref, out_ref,
               gates_ref):
    """One batch block per grid step; whole sequence + weights in VMEM.

    x_ref     : (T, b_blk, Dp)  time-major, zero-padded input block
    wih_ref   : (Dp, Hp)        W_ih^T (zero-padded)
    whh_ref   : (Hp, Hp)        W_hh^T (zero-padded)
    b_ref     : (1, Hp)         b_ih + b_hh (zero-padded)
    wfc_ref   : (Hp, Op)        W_fc^T (zero-padded)
    bfc_ref   : (1, Op)         b_fc   (zero-padded)
    out_ref   : (b_blk, Op)
    gates_ref : (T, b_blk, Hp)  VMEM scratch for the hoisted input projection
    """
    T, b_blk, Dp = x_ref.shape
    Hp = whh_ref.shape[0]

    # ---- Prologue: input projection for ALL timesteps of this batch block as
    # ONE MXU matmul with the combined bias folded in.  Stored to VMEM scratch
    # so the recurrence only keeps one step's tile live in vregs.
    x_flat = x_ref[...].reshape(T * b_blk, Dp)
    gates = (
        jnp.dot(x_flat, wih_ref[...], preferred_element_type=jnp.float32)
        + b_ref[...]
    )
    gates_ref[...] = gates.reshape(T, b_blk, Hp)

    # ---- Recurrence: the only truly serial part.  h is the fori_loop carry
    # (stays in vregs); gates_ref[t] is a dynamic leading-axis tile view;
    # W_hh is loaded from VMEM inside the body (not pinned across the loop).
    # T is small and static here -> unroll fully for LLO scheduler visibility.
    def step(t, h):
        hh = jnp.dot(h, whh_ref[...], preferred_element_type=jnp.float32)
        return jnp.tanh(gates_ref[t] + hh)

    h = lax.fori_loop(0, T, step, jnp.zeros((b_blk, Hp), jnp.float32),
                      unroll=True)

    # ---- Final FC on the last hidden state; lane-dense (b_blk, Op) store.
    out_ref[...] = (
        jnp.dot(h, wfc_ref[...], preferred_element_type=jnp.float32)
        + bfc_ref[...]
    ).astype(out_ref.dtype)


def pack_params(w_ih, w_hh, b_ih, b_hh, w_fc, b_fc):
    """Pad/transpose weights to lane-dense MXU layouts.

    Call ONCE per model and reuse the result; only x needs per-call packing.
    Zero padding of the H/D/O lanes is exactly neutral for the recurrence.
    """
    H, D = w_ih.shape
    O = w_fc.shape[0]
    Dp = _round_up(D, 128)
    Hp = _round_up(H, 128)
    Op = _round_up(O, 128)

    wih_p = jnp.zeros((Dp, Hp), jnp.float32).at[:D, :H].set(w_ih.T)
    whh_p = jnp.zeros((Hp, Hp), jnp.float32).at[:H, :H].set(w_hh.T)
    b_p = jnp.zeros((1, Hp), jnp.float32).at[0, :H].set(b_ih + b_hh)
    wfc_p = jnp.zeros((Hp, Op), jnp.float32).at[:H, :O].set(w_fc.T)
    bfc_p = jnp.zeros((1, Op), jnp.float32).at[0, :O].set(b_fc)
    return dict(wih=wih_p, whh=whh_p, b=b_p, wfc=wfc_p, bfc=bfc_p,
                D=D, H=H, O=O)


def basic_rnn_forward(x, params, *, b_blk=None):
    """x: (B, T, D_in) f32, params from pack_params. Returns (B, O) f32."""
    B, T, D = x.shape
    assert D == params["D"], "input feature size mismatch"
    O = params["O"]
    Dp = params["wih"].shape[0]
    Hp = params["whh"].shape[0]
    Op = params["wfc"].shape[1]

    # Batch tiling: one grid step per b_blk rows.  Bigger b_blk amortizes the
    # per-step W_hh stream over more MXU rows; multiple blocks (marked
    # "parallel") are sharded across the two TensorCores on v7x.
    if b_blk is None:
        b_blk = min(_round_up(B, 8), 128)
    Bp = _round_up(B, b_blk)
    n_blocks = Bp // b_blk

    # Per-call input packing: time-major + zero pad batch (sublanes) and D
    # (lanes).  Note: padded BATCH rows see the broadcast bias so their hidden
    # state is nonzero; they are independent of real rows and sliced off
    # below.  Padded D/H LANES stay exactly zero through the recurrence.
    x_tm = jnp.swapaxes(x, 0, 1).astype(jnp.float32)            # (T, B, D)
    x_p = jnp.zeros((T, Bp, Dp), jnp.float32).at[:, :B, :D].set(x_tm)

    out_p = pl.pallas_call(
        rnn_kernel,
        out_shape=jax.ShapeDtypeStruct((Bp, Op), jnp.float32),
        grid_spec=pltpu.PrefetchScalarGridSpec(
            num_scalar_prefetch=0,
            grid=(n_blocks,),
            in_specs=[
                pl.BlockSpec((T, b_blk, Dp), lambda b: (0, b, 0)),   # x block
                # Loop-invariant weights: constant block index -> DMA'd once.
                # TODO(synk): pipeline_mode=pl.Buffered(1) on these once H is
                # large enough that the unused second buffer matters (v7x
                # 64 MiB VMEM budget).
                pl.BlockSpec((Dp, Hp), lambda b: (0, 0)),            # W_ih^T
                pl.BlockSpec((Hp, Hp), lambda b: (0, 0)),            # W_hh^T
                pl.BlockSpec((1, Hp), lambda b: (0, 0)),             # b_ih+b_hh
                pl.BlockSpec((Hp, Op), lambda b: (0, 0)),            # W_fc^T
                pl.BlockSpec((1, Op), lambda b: (0, 0)),             # b_fc
            ],
            out_specs=pl.BlockSpec((b_blk, Op), lambda b: (b, 0)),
            scratch_shapes=[pltpu.VMEM((T, b_blk, Hp), jnp.float32)],
        ),
        compiler_params=pltpu.CompilerParams(
            dimension_semantics=("parallel",),
        ),
    )(x_p, params["wih"], params["whh"], params["b"],
      params["wfc"], params["bfc"])

    return out_p[:B, :O]


def _reference(x, w_ih, w_hh, b_ih, b_hh, w_fc, b_fc):
    """Pure-JAX reference matching torch.nn.RNN + Linear semantics."""
    B = x.shape[0]
    H = w_hh.shape[0]

    def step(h, x_t):
        h_new = jnp.tanh(x_t @ w_ih.T + b_ih + h @ w_hh.T + b_hh)
        return h_new, None

    h0 = jnp.zeros((B, H), jnp.float32)
    h_last, _ = jax.lax.scan(step, h0, jnp.swapaxes(x, 0, 1))
    return h_last @ w_fc.T + b_fc


if __name__ == "__main__":
    # Module defaults: input_size=10, hidden_size=20, num_layers=1, output_size=5
    B, T, D, H, O = 2, 8, 10, 20, 5

    key = jax.random.PRNGKey(0)
    ks = jax.random.split(key, 7)

    # Deterministic init mimicking PyTorch's uniform(-1/sqrt(H), 1/sqrt(H)).
    bound = 1.0 / jnp.sqrt(jnp.float32(H))
    x = jax.random.normal(ks[0], (B, T, D), dtype=jnp.float32)
    w_ih = jax.random.uniform(ks[1], (H, D), jnp.float32, -bound, bound)
    w_hh = jax.random.uniform(ks[2], (H, H), jnp.float32, -bound, bound)
    b_ih = jax.random.uniform(ks[3], (H,), jnp.float32, -bound, bound)
    b_hh = jax.random.uniform(ks[4], (H,), jnp.float32, -bound, bound)
    w_fc = jax.random.uniform(ks[5], (O, H), jnp.float32, -bound, bound)
    b_fc = jax.random.uniform(ks[6], (O,), jnp.float32, -bound, bound)

    # Weight packing hoisted out of the per-call path (do once, reuse).
    params = pack_params(w_ih, w_hh, b_ih, b_hh, w_fc, b_fc)
    params = jax.tree_util.tree_map(
        lambda v: jax.block_until_ready(v) if isinstance(v, jax.Array) else v,
        params)

    out = basic_rnn_forward(x, params)
    out = jax.block_until_ready(out)

    ref = _reference(x, w_ih, w_hh, b_ih, b_hh, w_fc, b_fc)
    assert out.shape == (B, O)
    assert jnp.allclose(out, ref, atol=1e-5, rtol=1e-5)

    print("KERNEL_OK")
</pallas_src>

<mosaic_0001>
module attributes {stable_mosaic.version = 11 : i64} {
  func.func @rnn_kernel(%arg0: i32, %arg1: memref<8x8x128xf32, #tpu.memory_space<vmem>>, %arg2: memref<128x128xf32, #tpu.memory_space<vmem>>, %arg3: memref<128x128xf32, #tpu.memory_space<vmem>>, %arg4: memref<1x128xf32, #tpu.memory_space<vmem>>, %arg5: memref<128x128xf32, #tpu.memory_space<vmem>>, %arg6: memref<1x128xf32, #tpu.memory_space<vmem>>, %arg7: memref<8x128xf32, #tpu.memory_space<vmem>>, %arg8: memref<8x8x128xf32, #tpu.memory_space<vmem>>) attributes {dimension_semantics = [#tpu.dimension_semantics<parallel>], iteration_bounds = array<i64: 1>, scalar_prefetch = 0 : i64, scratch_operands = 1 : i64, tpu.core_type = #tpu.core_type<tc>, window_params = [{transform_indices = @transform_0, window_bounds = array<i64: 8, 8, 128>}, {pipeline_mode = #tpu.pipeline_mode<synchronous>, transform_indices = @transform_1, window_bounds = array<i64: 128, 128>}, {pipeline_mode = #tpu.pipeline_mode<synchronous>, transform_indices = @transform_2, window_bounds = array<i64: 128, 128>}, {pipeline_mode = #tpu.pipeline_mode<synchronous>, transform_indices = @transform_3, window_bounds = array<i64: 1, 128>}, {pipeline_mode = #tpu.pipeline_mode<synchronous>, transform_indices = @transform_4, window_bounds = array<i64: 128, 128>}, {pipeline_mode = #tpu.pipeline_mode<synchronous>, transform_indices = @transform_5, window_bounds = array<i64: 1, 128>}, {transform_indices = @transform_6, window_bounds = array<i64: 8, 128>}]} {
    %c0 = arith.constant 0 : index
    %c0_0 = arith.constant 0 : index
    %c0_1 = arith.constant 0 : index
    %0 = vector.load %arg1[%c0, %c0_0, %c0_1] : memref<8x8x128xf32, #tpu.memory_space<vmem>>, vector<8x8x128xf32>
    %1 = vector.shape_cast %0 : vector<8x8x128xf32> to vector<64x128xf32>
    %c0_2 = arith.constant 0 : index
    %c0_3 = arith.constant 0 : index
    %2 = vector.load %arg2[%c0_2, %c0_3] : memref<128x128xf32, #tpu.memory_space<vmem>>, vector<128x128xf32>
    %cst = arith.constant dense<0.000000e+00> : vector<64x128xf32>
    %3 = tpu.matmul %1, %2, %cst {dimension_numbers = #tpu.dot_dimension_numbers<[1], [0], [0], [1], [0, 0, 1, 1], [], []>} : vector<64x128xf32>, vector<128x128xf32>, vector<64x128xf32> -> vector<64x128xf32>
    %c0_4 = arith.constant 0 : index
    %c0_5 = arith.constant 0 : index
    %4 = vector.load %arg4[%c0_4, %c0_5] : memref<1x128xf32, #tpu.memory_space<vmem>>, vector<1x128xf32>
    %5 = vector.broadcast %4 : vector<1x128xf32> to vector<64x128xf32>
    %6 = arith.addf %3, %5 : vector<64x128xf32>
    %7 = vector.shape_cast %6 : vector<64x128xf32> to vector<8x8x128xf32>
    %c0_6 = arith.constant 0 : index
    %c0_7 = arith.constant 0 : index
    %c0_8 = arith.constant 0 : index
    %8 = vector.load %arg8[%c0_6, %c0_7, %c0_8] : memref<8x8x128xf32, #tpu.memory_space<vmem>>, vector<8x8x128xf32>
    tpu.vector_store %arg8[%c0_6, %c0_7, %c0_8], %7 {strides = array<i32>} : memref<8x8x128xf32, #tpu.memory_space<vmem>>, vector<8x8x128xf32>,
    %cst_9 = arith.constant 0.000000e+00 : f32
    %9 = vector.broadcast %cst_9 : f32 to vector<8x128xf32>
    %c0_i32 = arith.constant 0 : i32
    %c0_10 = arith.constant 0 : index
    %c0_11 = arith.constant 0 : index
    %10 = vector.load %arg3[%c0_10, %c0_11] : memref<128x128xf32, #tpu.memory_space<vmem>>, vector<128x128xf32>
    %cst_12 = arith.constant dense<0.000000e+00> : vector<8x128xf32>
    %11 = tpu.matmul %9, %10, %cst_12 {dimension_numbers = #tpu.dot_dimension_numbers<[1], [0], [0], [1], [0, 0, 1, 1], [], []>} : vector<8x128xf32>, vector<128x128xf32>, vector<8x128xf32> -> vector<8x128xf32>
    %12 = arith.index_cast %c0_i32 : i32 to index
    %c0_13 = arith.constant 0 : index
    %c0_14 = arith.constant 0 : index
    %13 = vector.load %arg8[%12, %c0_13, %c0_14] : memref<8x8x128xf32, #tpu.memory_space<vmem>>, vector<1x8x128xf32>
    %14 = vector.shape_cast %13 : vector<1x8x128xf32> to vector<8x128xf32>
    %15 = arith.addf %14, %11 : vector<8x128xf32>
    %16 = math.tanh %15 : vector<8x128xf32>
    %c1_i32 = arith.constant 1 : i32
    %c0_15 = arith.constant 0 : index
    %c0_16 = arith.constant 0 : index
    %17 = vector.load %arg3[%c0_15, %c0_16] : memref<128x128xf32, #tpu.memory_space<vmem>>, vector<128x128xf32>
    %cst_17 = arith.constant dense<0.000000e+00> : vector<8x128xf32>
    %18 = tpu.matmul %16, %17, %cst_17 {dimension_numbers = #tpu.dot_dimension_numbers<[1], [0], [0], [1], [0, 0, 1, 1], [], []>} : vector<8x128xf32>, vector<128x128xf32>, vector<8x128xf32> -> vector<8x128xf32>
    %19 = arith.index_cast %c1_i32 : i32 to index
    %c0_18 = arith.constant 0 : index
    %c0_19 = arith.constant 0 : index
    %20 = vector.load %arg8[%19, %c0_18, %c0_19] : memref<8x8x128xf32, #tpu.memory_space<vmem>>, vector<1x8x128xf32>
    %21 = vector.shape_cast %20 : vector<1x8x128xf32> to vector<8x128xf32>
    %22 = arith.addf %21, %18 : vector<8x128xf32>
    %23 = math.tanh %22 : vector<8x128xf32>
    %c2_i32 = arith.constant 2 : i32
    %c0_20 = arith.constant 0 : index
    %c0_21 = arith.constant 0 : index
    %24 = vector.load %arg3[%c0_20, %c0_21] : memref<128x128xf32, #tpu.memory_space<vmem>>, vector<128x128xf32>
    %cst_22 = arith.constant dense<0.000000e+00> : vector<8x128xf32>
    %25 = tpu.matmul %23, %24, %cst_22 {dimension_numbers = #tpu.dot_dimension_numbers<[1], [0], [0], [1], [0, 0, 1, 1], [], []>} : vector<8x128xf32>, vector<128x128xf32>, vector<8x128xf32> -> vector<8x128xf32>
    %26 = arith.index_cast %c2_i32 : i32 to index
    %c0_23 = arith.constant 0 : index
    %c0_24 = arith.constant 0 : index
    %27 = vector.load %arg8[%26, %c0_23, %c0_24] : memref<8x8x128xf32, #tpu.memory_space<vmem>>, vector<1x8x128xf32>
    %28 = vector.shape_cast %27 : vector<1x8x128xf32> to vector<8x128xf32>
    %29 = arith.addf %28, %25 : vector<8x128xf32>
    %30 = math.tanh %29 : vector<8x128xf32>
    %c3_i32 = arith.constant 3 : i32
    %c0_25 = arith.constant 0 : index
    %c0_26 = arith.constant 0 : index
    %31 = vector.load %arg3[%c0_25, %c0_26] : memref<128x128xf32, #tpu.memory_space<vmem>>, vector<128x128xf32>
    %cst_27 = arith.constant dense<0.000000e+00> : vector<8x128xf32>
    %32 = tpu.matmul %30, %31, %cst_27 {dimension_numbers = #tpu.dot_dimension_numbers<[1], [0], [0], [1], [0, 0, 1, 1], [], []>} : vector<8x128xf32>, vector<128x128xf32>, vector<8x128xf32> -> vector<8x128xf32>
    %33 = arith.index_cast %c3_i32 : i32 to index
    %c0_28 = arith.constant 0 : index
    %c0_29 = arith.constant 0 : index
    %34 = vector.load %arg8[%33, %c0_28, %c0_29] : memref<8x8x128xf32, #tpu.memory_space<vmem>>, vector<1x8x128xf32>
    %35 = vector.shape_cast %34 : vector<1x8x128xf32> to vector<8x128xf32>
    %36 = arith.addf %35, %32 : vector<8x128xf32>
    %37 = math.tanh %36 : vector<8x128xf32>
    %c4_i32 = arith.constant 4 : i32
    %c0_30 = arith.constant 0 : index
    %c0_31 = arith.constant 0 : index
    %38 = vector.load %arg3[%c0_30, %c0_31] : memref<128x128xf32, #tpu.memory_space<vmem>>, vector<128x128xf32>
    %cst_32 = arith.constant dense<0.000000e+00> : vector<8x128xf32>
    %39 = tpu.matmul %37, %38, %cst_32 {dimension_numbers = #tpu.dot_dimension_numbers<[1], [0], [0], [1], [0, 0, 1, 1], [], []>} : vector<8x128xf32>, vector<128x128xf32>, vector<8x128xf32> -> vector<8x128xf32>
    %40 = arith.index_cast %c4_i32 : i32 to index
    %c0_33 = arith.constant 0 : index
    %c0_34 = arith.constant 0 : index
    %41 = vector.load %arg8[%40, %c0_33, %c0_34] : memref<8x8x128xf32, #tpu.memory_space<vmem>>, vector<1x8x128xf32>
    %42 = vector.shape_cast %41 : vector<1x8x128xf32> to vector<8x128xf32>
    %43 = arith.addf %42, %39 : vector<8x128xf32>
    %44 = math.tanh %43 : vector<8x128xf32>
    %c5_i32 = arith.constant 5 : i32
    %c0_35 = arith.constant 0 : index
    %c0_36 = arith.constant 0 : index
    %45 = vector.load %arg3[%c0_35, %c0_36] : memref<128x128xf32, #tpu.memory_space<vmem>>, vector<128x128xf32>
    %cst_37 = arith.constant dense<0.000000e+00> : vector<8x128xf32>
    %46 = tpu.matmul %44, %45, %cst_37 {dimension_numbers = #tpu.dot_dimension_numbers<[1], [0], [0], [1], [0, 0, 1, 1], [], []>} : vector<8x128xf32>, vector<128x128xf32>, vector<8x128xf32> -> vector<8x128xf32>
    %47 = arith.index_cast %c5_i32 : i32 to index
    %c0_38 = arith.constant 0 : index
    %c0_39 = arith.constant 0 : index
    %48 = vector.load %arg8[%47, %c0_38, %c0_39] : memref<8x8x128xf32, #tpu.memory_space<vmem>>, vector<1x8x128xf32>
    %49 = vector.shape_cast %48 : vector<1x8x128xf32> to vector<8x128xf32>
    %50 = arith.addf %49, %46 : vector<8x128xf32>
    %51 = math.tanh %50 : vector<8x128xf32>
    %c6_i32 = arith.constant 6 : i32
    %c0_40 = arith.constant 0 : index
    %c0_41 = arith.constant 0 : index
    %52 = vector.load %arg3[%c0_40, %c0_41] : memref<128x128xf32, #tpu.memory_space<vmem>>, vector<128x128xf32>
    %cst_42 = arith.constant dense<0.000000e+00> : vector<8x128xf32>
    %53 = tpu.matmul %51, %52, %cst_42 {dimension_numbers = #tpu.dot_dimension_numbers<[1], [0], [0], [1], [0, 0, 1, 1], [], []>} : vector<8x128xf32>, vector<128x128xf32>, vector<8x128xf32> -> vector<8x128xf32>
    %54 = arith.index_cast %c6_i32 : i32 to index
    %c0_43 = arith.constant 0 : index
    %c0_44 = arith.constant 0 : index
    %55 = vector.load %arg8[%54, %c0_43, %c0_44] : memref<8x8x128xf32, #tpu.memory_space<vmem>>, vector<1x8x128xf32>
    %56 = vector.shape_cast %55 : vector<1x8x128xf32> to vector<8x128xf32>
    %57 = arith.addf %56, %53 : vector<8x128xf32>
    %58 = math.tanh %57 : vector<8x128xf32>
    %c7_i32 = arith.constant 7 : i32
    %c0_45 = arith.constant 0 : index
    %c0_46 = arith.constant 0 : index
    %59 = vector.load %arg3[%c0_45, %c0_46] : memref<128x128xf32, #tpu.memory_space<vmem>>, vector<128x128xf32>
    %cst_47 = arith.constant dense<0.000000e+00> : vector<8x128xf32>
    %60 = tpu.matmul %58, %59, %cst_47 {dimension_numbers = #tpu.dot_dimension_numbers<[1], [0], [0], [1], [0, 0, 1, 1], [], []>} : vector<8x128xf32>, vector<128x128xf32>, vector<8x128xf32> -> vector<8x128xf32>
    %61 = arith.index_cast %c7_i32 : i32 to index
    %c0_48 = arith.constant 0 : index
    %c0_49 = arith.constant 0 : index
    %62 = vector.load %arg8[%61, %c0_48, %c0_49] : memref<8x8x128xf32, #tpu.memory_space<vmem>>, vector<1x8x128xf32>
    %63 = vector.shape_cast %62 : vector<1x8x128xf32> to vector<8x128xf32>
    %64 = arith.addf %63, %60 : vector<8x128xf32>
    %65 = math.tanh %64 : vector<8x128xf32>
    %c8_i32 = arith.constant 8 : i32
    %c0_50 = arith.constant 0 : index
    %c0_51 = arith.constant 0 : index
    %66 = vector.load %arg5[%c0_50, %c0_51] : memref<128x128xf32, #tpu.memory_space<vmem>>, vector<128x128xf32>
    %cst_52 = arith.constant dense<0.000000e+00> : vector<8x128xf32>
    %67 = tpu.matmul %65, %66, %cst_52 {dimension_numbers = #tpu.dot_dimension_numbers<[1], [0], [0], [1], [0, 0, 1, 1], [], []>} : vector<8x128xf32>, vector<128x128xf32>, vector<8x128xf32> -> vector<8x128xf32>
    %c0_53 = arith.constant 0 : index
    %c0_54 = arith.constant 0 : index
    %68 = vector.load %arg6[%c0_53, %c0_54] : memref<1x128xf32, #tpu.memory_space<vmem>>, vector<1x128xf32>
    %69 = vector.broadcast %68 : vector<1x128xf32> to vector<8x128xf32>
    %70 = arith.addf %67, %69 : vector<8x128xf32>
    %c0_55 = arith.constant 0 : index
    %c0_56 = arith.constant 0 : index
    %71 = vector.load %arg7[%c0_55, %c0_56] : memref<8x128xf32, #tpu.memory_space<vmem>>, vector<8x128xf32>
    tpu.vector_store %arg7[%c0_55, %c0_56], %70 {strides = array<i32>} : memref<8x128xf32, #tpu.memory_space<vmem>>, vector<8x128xf32>,
    return
  }
  func.func @transform_0(%arg0: i32) -> (i32, i32, i32) {
    %c0_i32 = arith.constant 0 : i32
    %c0_i32_0 = arith.constant 0 : i32
    %c0_i32_1 = arith.constant 0 : i32
    return %c0_i32, %arg0, %c0_i32_0 : i32, i32, i32
  }
  func.func @transform_1(%arg0: i32) -> (i32, i32) {
    %c0_i32 = arith.constant 0 : i32
    %c0_i32_0 = arith.constant 0 : i32
    %c0_i32_1 = arith.constant 0 : i32
    return %c0_i32, %c0_i32_0 : i32, i32
  }
  func.func @transform_2(%arg0: i32) -> (i32, i32) {
    %c0_i32 = arith.constant 0 : i32
    %c0_i32_0 = arith.constant 0 : i32
    %c0_i32_1 = arith.constant 0 : i32
    return %c0_i32, %c0_i32_0 : i32, i32
  }
  func.func @transform_3(%arg0: i32) -> (i32, i32) {
    %c0_i32 = arith.constant 0 : i32
    %c0_i32_0 = arith.constant 0 : i32
    %c0_i32_1 = arith.constant 0 : i32
    return %c0_i32, %c0_i32_0 : i32, i32
  }
  func.func @transform_4(%arg0: i32) -> (i32, i32) {
    %c0_i32 = arith.constant 0 : i32
    %c0_i32_0 = arith.constant 0 : i32
    %c0_i32_1 = arith.constant 0 : i32
    return %c0_i32, %c0_i32_0 : i32, i32
  }
  func.func @transform_5(%arg0: i32) -> (i32, i32) {
    %c0_i32 = arith.constant 0 : i32
    %c0_i32_0 = arith.constant 0 : i32
    %c0_i32_1 = arith.constant 0 : i32
    return %c0_i32, %c0_i32_0 : i32, i32
  }
  func.func @transform_6(%arg0: i32) -> (i32, i32) {
    %c0_i32 = arith.constant 0 : i32
    %c0_i32_0 = arith.constant 0 : i32
    return %arg0, %c0_i32 : i32, i32
  }
}

</mosaic_0001>

<bundles_post_ra>
// kernel: tpu_custom_call.1
= control target key start
LH: loop header
LB: loop body
LE: loop exit
PB: predicated region body
PF: predicated region fallthrough
CT: control target
= control target key end

     0   :  { %11 = vsyncpa [#allocation4], 0  ;;  %s819_s0 = inlined_call_operand.hbm [shape: f32[8,8,128], index: 0, kind: input, shape index: {}]   ;;  %s820_s1 = inlined_call_operand.hbm [shape: f32[128,128], index: 1, kind: input, shape index: {}]   ;;  %s821_s2 = inlined_call_operand.hbm [shape: f32[128,128], index: 2, kind: input, shape index: {}]   ;;  %s822_s3 = inlined_call_operand.vmem [shape: f32[1,128], index: 3, kind: input, shape index: {}]   ;;  %s823_s4 = inlined_call_operand.hbm [shape: f32[128,128], index: 4, kind: input, shape index: {}]   ;;  %s824_s5 = inlined_call_operand.vmem [shape: f32[1,128], index: 5, kind: input, shape index: {}]   ;;  %s825_s6 = inlined_call_operand.hbm [shape: f32[8,128], index: 6, kind: output, shape index: {}]  }
   0x1   :  { %12 = vsyncpa [#allocation7], 0 }
   0x2   :  { %13 = vsyncpa [#allocation10], 0 }
   0x3   :  { %14 = vsyncpa [#allocation5], 0  ;;  %s32_s23 = sshll.u32 %s820_s1, 4  ;;  %s585_s24 = smov [#allocation6]   ;;  %s33_s23 = int_to_ptr.hbm [resolvable:$true] %s32_s23 }
   0x4   :  { %s34_s25 = sshll.u32 %s585_s24, 4  ;;  %s19_s28 = sshll.u32 %s819_s0, 4  ;;  %s35_s25 = int_to_ptr.vmem [resolvable:$true] %s34_s25  ;;  %s20_s28 = int_to_ptr.hbm [resolvable:$true] %s19_s28 }
   0x5   :  { %s586_s29 = smov 128   ;;  %s587_s30 = smov 8  }
   0x6   :  { %40 = dma.hbm_to_vmem [thread:$0]  %s33_s23, 2048, %s35_s25, [#allocation7], %s586_s29, %s586_s29, %s587_s30  }
   0x7   :  { %s588_s7 = smov [#allocation3]   ;;  %s45_s11 = sshll.u32 %s821_s2, 4  ;;  %s46_s11 = int_to_ptr.hbm [resolvable:$true] %s45_s11 }
   0x8   :  { %s21_s8 = sshll.u32 %s588_s7, 4  ;;  %s60_s13 = sshll.u32 %s823_s4, 4  ;;  %s22_s8 = int_to_ptr.vmem [resolvable:$true] %s21_s8  ;;  %s61_s13 = int_to_ptr.hbm [resolvable:$true] %s60_s13 }
   0x9   :  { %27 = dma.hbm_to_vmem [thread:$0]  %s20_s28, 1024, %s22_s8, [#allocation4], %s586_s29, %s586_s29, %s587_s30  }
   0xa   :  { %s589_s14 = smov [#allocation8]   ;;  %s590_s0 = smov [#allocation9]  }
   0xb   :  { %s47_s15 = sshll.u32 %s589_s14, 4  ;;  %s62_s16 = sshll.u32 %s590_s0, 4  ;;  %s48_s15 = int_to_ptr.vmem [resolvable:$true] %s47_s15  ;;  %s63_s16 = int_to_ptr.vmem [resolvable:$true] %s62_s16 }
   0xc   :  { %53 = dma.hbm_to_vmem [thread:$0]  %s46_s11, 2048, %s48_s15, [#allocation7], %s586_s29, %s586_s29, %s587_s30  }
   0xd   :  { %68 = dma.hbm_to_vmem [thread:$0]  %s61_s13, 2048, %s63_s16, [#allocation10], %s586_s29, %s586_s29, %s587_s30  }
   0xe   :  { %577 = dma.done.wait [#allocation4], 1024  }
   0xf   :  { %578 = vsyncadd [#allocation4], 4294966272 }
  0x10   :  { %579 = dma.done.wait [#allocation7], 4096  }
  0x11   :  { %580 = vsyncadd [#allocation7], 4294963200 }
  0x12   :  { %581 = dma.done.wait [#allocation10], 2048  }
  0x13   :  { %582 = vsyncadd [#allocation10], 4294965248  ;;  %v110_v0 = vld [vmem:[#allocation6 + $0x78] sm:$0xff]  ;;  %v109_v1 = vld [vmem:[#allocation6 + $0x70] sm:$0xff]  ;;  %v591_v33 = vmov 0.0   ;;  %s592_s18 = smov [#allocation11]  }
  0x14   :  { %v640_v2 = vld [vmem:[#allocation8 + $0x78] sm:$0xff]  ;;  %115 = vmatpush.msra.mxu0 %v110_v0  ;;  %v643_v3 = vld [vmem:[#allocation8 + $0x70] sm:$0xff]  ;;  %v108_v4 = vld [vmem:[#allocation6 + $0x68] sm:$0xff]  ;;  %s417_s19 = sshll.u32 %s592_s18, 4  ;;  %s419_s22 = sshll.u32 %s825_s6, 4  ;;  %s418_s19 = int_to_ptr.vmem [resolvable:$true] %s417_s19  ;;  %s420_s22 = int_to_ptr.hbm [resolvable:$true] %s419_s22 }
  0x15   :  { %180 = vmatpush.msra.mxu1 %v640_v2  ;;  %v645_v5 = vld [vmem:[#allocation8 + $0x68] sm:$0xff]  ;;  %203 = vmatpush.msra.mxu2 %v640_v2  ;;  %v107_v6 = vld [vmem:[#allocation6 + $0x60] sm:$0xff]  ;;  %v106_v8 = vld [vmem:[#allocation6 + $0x58] sm:$0xff] }
  0x16   :  { %227 = vmatpush.msra.mxu3 %v640_v2  ;;  %116 = vmatpush.msra.mxu0 %v109_v1  ;;  %v650_v7 = vld [vmem:[#allocation8 + $0x60] sm:$0xff]  ;;  %v655_v9 = vld [vmem:[#allocation8 + $0x58] sm:$0xff]  ;;  %v105_v10 = vld [vmem:[#allocation6 + $0x50] sm:$0xff] }
  0x17   :  { %181 = vmatpush.msra.mxu1 %v643_v3  ;;  %204 = vmatpush.msra.mxu2 %v643_v3  ;;  %v660_v11 = vld [vmem:[#allocation8 + $0x50] sm:$0xff]  ;;  %v104_v12 = vld [vmem:[#allocation6 + $0x48] sm:$0xff]  ;;  %v103_v14 = vld [vmem:[#allocation6 + $0x40] sm:$0xff] }
  0x18   :  { %228 = vmatpush.msra.mxu3 %v643_v3  ;;  %117 = vmatpush.msra.mxu0 %v108_v4  ;;  %v665_v13 = vld [vmem:[#allocation8 + $0x48] sm:$0xff]  ;;  %v670_v15 = vld [vmem:[#allocation8 + $0x40] sm:$0xff]  ;;  %v102_v16 = vld [vmem:[#allocation6 + $0x38] sm:$0xff] }
  0x19   :  { %182 = vmatpush.msra.mxu1 %v645_v5  ;;  %205 = vmatpush.msra.mxu2 %v645_v5  ;;  %v675_v17 = vld [vmem:[#allocation8 + $0x38] sm:$0xff]  ;;  %v101_v18 = vld [vmem:[#allocation6 + $0x30] sm:$0xff]  ;;  %v100_v20 = vld [vmem:[#allocation6 + $0x28] sm:$0xff] }
  0x1a   :  { %229 = vmatpush.msra.mxu3 %v645_v5  ;;  %118 = vmatpush.msra.mxu0 %v107_v6  ;;  %v680_v19 = vld [vmem:[#allocation8 + $0x30] sm:$0xff]  ;;  %v685_v21 = vld [vmem:[#allocation8 + $0x28] sm:$0xff]  ;;  %v99_v22 = vld [vmem:[#allocation6 + $0x20] sm:$0xff] }
  0x1b   :  { %183 = vmatpush.msra.mxu1 %v650_v7  ;;  %206 = vmatpush.msra.mxu2 %v650_v7  ;;  %v690_v23 = vld [vmem:[#allocation8 + $0x20] sm:$0xff]  ;;  %v98_v24 = vld [vmem:[#allocation6 + $0x18] sm:$0xff]  ;;  %v97_v26 = vld [vmem:[#allocation6 + $0x10] sm:$0xff] }
  0x1c   :  { %230 = vmatpush.msra.mxu3 %v650_v7  ;;  %119 = vmatpush.msra.mxu0 %v106_v8  ;;  %v695_v25 = vld [vmem:[#allocation8 + $0x18] sm:$0xff]  ;;  %v700_v27 = vld [vmem:[#allocation8 + $0x10] sm:$0xff]  ;;  %v96_v28 = vld [vmem:[#allocation6 + $0x8] sm:$0xff] }
  0x1d   :  { %184 = vmatpush.msra.mxu1 %v655_v9  ;;  %207 = vmatpush.msra.mxu2 %v655_v9  ;;  %v705_v29 = vld [vmem:[#allocation8 + $0x8] sm:$0xff]  ;;  %v95_v30 = vld [vmem:[#allocation6] sm:$0xff]  ;;  %v89_v41 = vld [vmem:[#allocation3 + $0x10] sm:$0xff] }
  0x1e   :  { %231 = vmatpush.msra.mxu3 %v655_v9  ;;  %120 = vmatpush.msra.mxu0 %v105_v10  ;;  %v710_v31 = vld [vmem:[#allocation8] sm:$0xff]  ;;  %v88_v34 = vld [vmem:[#allocation3 + $0x8] sm:$0xff]  ;;  %v90_v47 = vld [vmem:[#allocation3 + $0x18] sm:$0xff] }
  0x1f   :  { %185 = vmatpush.msra.mxu1 %v660_v11  ;;  %208 = vmatpush.msra.mxu2 %v660_v11  ;;  %v87_v32 = vld [vmem:[#allocation3] sm:$0xff]  ;;  %v92_v59 = vld [vmem:[#allocation3 + $0x28] sm:$0xff]  ;;  %v93_v60 = vld [vmem:[#allocation3 + $0x30] sm:$0xff] }
  0x20   :  { %232 = vmatpush.msra.mxu3 %v660_v11  ;;  %121 = vmatpush.msra.mxu0 %v104_v12  ;;  %v803_v35 = vld [vmem:[%s822_s3] ss:$0 sm:$0xff]  ;;  %v386_v8 = vld [vmem:[#allocation9 + $0x78] sm:$0xff] }
  0x21   :  { %186 = vmatpush.msra.mxu1 %v665_v13  ;;  %209 = vmatpush.msra.mxu2 %v665_v13  ;;  %v91_v53 = vld [vmem:[#allocation3 + $0x20] sm:$0xff] }
  0x22   :  { %233 = vmatpush.msra.mxu3 %v665_v13  ;;  %122 = vmatpush.msra.mxu0 %v103_v14  ;;  %v383_v12 = vld [vmem:[#allocation9 + $0x60] sm:$0xff]  ;;  %v381_v14 = vld [vmem:[#allocation9 + $0x50] sm:$0xff] }
  0x23   :  { %187 = vmatpush.msra.mxu1 %v670_v15  ;;  %210 = vmatpush.msra.mxu2 %v670_v15 }
  0x24   :  { %234 = vmatpush.msra.mxu3 %v670_v15  ;;  %123 = vmatpush.msra.mxu0 %v102_v16 }
  0x25   :  { %188 = vmatpush.msra.mxu1 %v675_v17  ;;  %211 = vmatpush.msra.mxu2 %v675_v17 }
  0x26   :  { %235 = vmatpush.msra.mxu3 %v675_v17  ;;  %124 = vmatpush.msra.mxu0 %v101_v18  ;;  %v378_v18 = vld [vmem:[#allocation9 + $0x38] sm:$0xff] }
  0x27   :  { %189 = vmatpush.msra.mxu1 %v680_v19  ;;  %212 = vmatpush.msra.mxu2 %v680_v19 }
  0x28   :  { %236 = vmatpush.msra.mxu3 %v680_v19  ;;  %125 = vmatpush.msra.mxu0 %v100_v20  ;;  %v376_v20 = vld [vmem:[#allocation9 + $0x28] sm:$0xff] }
  0x29   :  { %190 = vmatpush.msra.mxu1 %v685_v21  ;;  %213 = vmatpush.msra.mxu2 %v685_v21 }
  0x2a   :  { %237 = vmatpush.msra.mxu3 %v685_v21  ;;  %126 = vmatpush.msra.mxu0 %v99_v22 }
  0x2b   :  { %191 = vmatpush.msra.mxu1 %v690_v23  ;;  %214 = vmatpush.msra.mxu2 %v690_v23 }
  0x2c   :  { %238 = vmatpush.msra.mxu3 %v690_v23  ;;  %127 = vmatpush.msra.mxu0 %v98_v24 }
  0x2d   :  { %192 = vmatpush.msra.mxu1 %v695_v25  ;;  %215 = vmatpush.msra.mxu2 %v695_v25 }
  0x2e   :  { %239 = vmatpush.msra.mxu3 %v695_v25  ;;  %128 = vmatpush.msra.mxu0 %v97_v26  ;;  %v374_v26 = vld [vmem:[#allocation9 + $0x18] sm:$0xff] }
  0x2f   :  { %193 = vmatpush.msra.mxu1 %v700_v27  ;;  %216 = vmatpush.msra.mxu2 %v700_v27 }
  0x30   :  { %240 = vmatpush.msra.mxu3 %v700_v27  ;;  %129 = vmatpush.msra.mxu0 %v96_v28  ;;  %v372_v28 = vld [vmem:[#allocation9 + $0x8] sm:$0xff] }
  0x31   :  { %194 = vmatpush.msra.mxu1 %v705_v29  ;;  %217 = vmatpush.msra.mxu2 %v705_v29 }
  0x32   :  { %241 = vmatpush.msra.mxu3 %v705_v29  ;;  %130 = vmatpush.msra.mxu0 %v95_v30 }
  0x33   :  { %195 = vmatpush.msra.mxu1 %v710_v31  ;;  %131 = vmatmul.f32.vlgmr.msra.gmra.mxu0 %v87_v32 }
  0x34   :  { %196 = vmatmul.f32.vlgmr.msra.gmra.mxu1 %v591_v33  ;;  %218 = vmatpush.msra.mxu2 %v710_v31 }
  0x35   :  { %242 = vmatpush.msra.mxu3 %v710_v31  ;;  %251 = vmatpush.msrb.mxu1 %v640_v2 }
  0x36   :  { %275 = vmatpush.msrb.mxu2 %v640_v2  ;;  %323 = vmatpush.msrb.mxu0 %v640_v2 }
  0x37   :  { %299 = vmatpush.msrb.mxu3 %v640_v2  ;;  %252 = vmatpush.msrb.mxu1 %v643_v3 }
  0x38   :  { %276 = vmatpush.msrb.mxu2 %v643_v3  ;;  %324 = vmatpush.msrb.mxu0 %v643_v3 }
  0x39   :  { %300 = vmatpush.msrb.mxu3 %v643_v3  ;;  %253 = vmatpush.msrb.mxu1 %v645_v5 }
  0x3a   :  { %277 = vmatpush.msrb.mxu2 %v645_v5  ;;  %325 = vmatpush.msrb.mxu0 %v645_v5 }
  0x3b   :  { %301 = vmatpush.msrb.mxu3 %v645_v5  ;;  %254 = vmatpush.msrb.mxu1 %v650_v7 }
  0x3c   :  { %278 = vmatpush.msrb.mxu2 %v650_v7  ;;  %326 = vmatpush.msrb.mxu0 %v650_v7 }
  0x3d   :  { %302 = vmatpush.msrb.mxu3 %v650_v7  ;;  %255 = vmatpush.msrb.mxu1 %v655_v9 }
  0x3e   :  { %279 = vmatpush.msrb.mxu2 %v655_v9  ;;  %327 = vmatpush.msrb.mxu0 %v655_v9 }
  0x3f   :  { %303 = vmatpush.msrb.mxu3 %v655_v9  ;;  %256 = vmatpush.msrb.mxu1 %v660_v11 }
  0x40   :  { %280 = vmatpush.msrb.mxu2 %v660_v11  ;;  %328 = vmatpush.msrb.mxu0 %v660_v11 }
  0x41   :  { %304 = vmatpush.msrb.mxu3 %v660_v11  ;;  %257 = vmatpush.msrb.mxu1 %v665_v13 }
  0x42   :  { %281 = vmatpush.msrb.mxu2 %v665_v13  ;;  %329 = vmatpush.msrb.mxu0 %v665_v13 }
  0x43   :  { %305 = vmatpush.msrb.mxu3 %v665_v13  ;;  %258 = vmatpush.msrb.mxu1 %v670_v15 }
  0x44   :  { %282 = vmatpush.msrb.mxu2 %v670_v15  ;;  %330 = vmatpush.msrb.mxu0 %v670_v15 }
  0x45   :  { %306 = vmatpush.msrb.mxu3 %v670_v15  ;;  %259 = vmatpush.msrb.mxu1 %v675_v17 }
  0x46   :  { %283 = vmatpush.msrb.mxu2 %v675_v17  ;;  %331 = vmatpush.msrb.mxu0 %v675_v17 }
  0x47   :  { %307 = vmatpush.msrb.mxu3 %v675_v17  ;;  %260 = vmatpush.msrb.mxu1 %v680_v19 }
  0x48   :  { %284 = vmatpush.msrb.mxu2 %v680_v19  ;;  %332 = vmatpush.msrb.mxu0 %v680_v19 }
  0x49   :  { %308 = vmatpush.msrb.mxu3 %v680_v19  ;;  %261 = vmatpush.msrb.mxu1 %v685_v21 }
  0x4a   :  { %285 = vmatpush.msrb.mxu2 %v685_v21  ;;  %333 = vmatpush.msrb.mxu0 %v685_v21 }
  0x4b   :  { %309 = vmatpush.msrb.mxu3 %v685_v21  ;;  %262 = vmatpush.msrb.mxu1 %v690_v23 }
  0x4c   :  { %286 = vmatpush.msrb.mxu2 %v690_v23  ;;  %334 = vmatpush.msrb.mxu0 %v690_v23 }
  0x4d   :  { %310 = vmatpush.msrb.mxu3 %v690_v23  ;;  %263 = vmatpush.msrb.mxu1 %v695_v25 }
  0x4e   :  { %287 = vmatpush.msrb.mxu2 %v695_v25  ;;  %335 = vmatpush.msrb.mxu0 %v695_v25 }
  0x4f   :  { %311 = vmatpush.msrb.mxu3 %v695_v25  ;;  %264 = vmatpush.msrb.mxu1 %v700_v27 }
  0x50   :  { %288 = vmatpush.msrb.mxu2 %v700_v27  ;;  %336 = vmatpush.msrb.mxu0 %v700_v27 }
  0x51   :  { %312 = vmatpush.msrb.mxu3 %v700_v27  ;;  %265 = vmatpush.msrb.mxu1 %v705_v29 }
  0x52   :  { %289 = vmatpush.msrb.mxu2 %v705_v29  ;;  %337 = vmatpush.msrb.mxu0 %v705_v29 }
  0x53   :  { %313 = vmatpush.msrb.mxu3 %v705_v29  ;;  %266 = vmatpush.msrb.mxu1 %v710_v31 }
  0x54   :  { %290 = vmatpush.msrb.mxu2 %v710_v31  ;;  %338 = vmatpush.msrb.mxu0 %v710_v31 }
  0x55   :  { %314 = vmatpush.msrb.mxu3 %v710_v31  ;;  %347 = vmatpush.msra.mxu1 %v640_v2  ;;  %v94_v2 = vld [vmem:[#allocation3 + $0x38] sm:$0xff] }
  0x56   :  { %134 = vmatmul.f32.gmra.mxu0 %v88_v34  ;;  %v440_v34 = vld [vmem:[%s824_s5] ss:$0 sm:$0xff] }
  0x57   :  { %348 = vmatpush.msra.mxu1 %v643_v3 }
  0x59   :  { %349 = vmatpush.msra.mxu1 %v645_v5 }
  0x5b   :  { %350 = vmatpush.msra.mxu1 %v650_v7 }
  0x5d   :  { %351 = vmatpush.msra.mxu1 %v655_v9  ;;  %v385_v9 = vld [vmem:[#allocation9 + $0x70] sm:$0xff] }
  0x5e   :  { %137 = vmatmul.f32.gmra.mxu0 %v89_v41 }
  0x5f   :  { %352 = vmatpush.msra.mxu1 %v660_v11  ;;  %v384_v11 = vld [vmem:[#allocation9 + $0x68] sm:$0xff] }
  0x61   :  { %353 = vmatpush.msra.mxu1 %v665_v13  ;;  %v382_v13 = vld [vmem:[#allocation9 + $0x58] sm:$0xff] }
  0x63   :  { %354 = vmatpush.msra.mxu1 %v670_v15  ;;  %v380_v15 = vld [vmem:[#allocation9 + $0x48] sm:$0xff] }
  0x65   :  { %355 = vmatpush.msra.mxu1 %v675_v17  ;;  %v379_v17 = vld [vmem:[#allocation9 + $0x40] sm:$0xff] }
  0x66   :  { %140 = vmatmul.f32.gmra.mxu0 %v90_v47 }
  0x67   :  { %356 = vmatpush.msra.mxu1 %v680_v19  ;;  %v377_v19 = vld [vmem:[#allocation9 + $0x30] sm:$0xff] }
  0x69   :  { %357 = vmatpush.msra.mxu1 %v685_v21 }
  0x6b   :  { %358 = vmatpush.msra.mxu1 %v690_v23 }
  0x6d   :  { %359 = vmatpush.msra.mxu1 %v695_v25  ;;  %v375_v25 = vld [vmem:[#allocation9 + $0x20] sm:$0xff] }
  0x6e   :  { %143 = vmatmul.f32.gmra.mxu0 %v91_v53 }
  0x6f   :  { %360 = vmatpush.msra.mxu1 %v700_v27  ;;  %v373_v27 = vld [vmem:[#allocation9 + $0x10] sm:$0xff] }
  0x71   :  { %361 = vmatpush.msra.mxu1 %v705_v29  ;;  %v371_v29 = vld [vmem:[#allocation9] sm:$0xff] }
  0x73   :  { %362 = vmatpush.msra.mxu1 %v710_v31 }
  0x76   :  { %146 = vmatmul.f32.gmra.mxu0 %v92_v59 }
  0x7e   :  { %149 = vmatmul.f32.gmra.mxu0 %v93_v60 }
  0x86   :  { %152 = vmatmul.f32.gmra.mxu0 %v94_v2 }
  0xb0   :  { %v132_v36 = vpop.f32.mrf.mxu0 }
  0xb1   :  { %v197_v37 = vpop.f32.mrf.mxu1  ;;  %v133_v38 = vadd.f32 %v803_v35, %v132_v36 }
  0xb3   :  { %v201_v39 = vadd.f32 %v197_v37, %v133_v38 }
  0xb5   :  { %441 = vtanh.f32 %v201_v39 }
  0xbb   :  { %v442_v40 = vpop.eup %441 }
  0xbc   :  { %219 = vmatmul.f32.vlgmr.msra.gmra.mxu2 %v442_v40 }
  0xbd   :  { %391 = vmatpush.msra.mxu2 %v386_v8 }
  0xbf   :  { %392 = vmatpush.msra.mxu2 %v385_v9 }
  0xc1   :  { %393 = vmatpush.msra.mxu2 %v384_v11 }
  0xc3   :  { %394 = vmatpush.msra.mxu2 %v383_v12 }
  0xc5   :  { %395 = vmatpush.msra.mxu2 %v382_v13 }
  0xc7   :  { %396 = vmatpush.msra.mxu2 %v381_v14 }
  0xc9   :  { %397 = vmatpush.msra.mxu2 %v380_v15 }
  0xcb   :  { %398 = vmatpush.msra.mxu2 %v379_v17 }
  0xcd   :  { %399 = vmatpush.msra.mxu2 %v378_v18 }
  0xcf   :  { %400 = vmatpush.msra.mxu2 %v377_v19 }
  0xd1   :  { %401 = vmatpush.msra.mxu2 %v376_v20 }
  0xd3   :  { %v135_v42 = vpop.f32.mrf.mxu0  ;;  %402 = vmatpush.msra.mxu2 %v375_v25 }
  0xd4   :  { %v136_v43 = vadd.f32 %v803_v35, %v135_v42 }
  0xd5   :  { %403 = vmatpush.msra.mxu2 %v374_v26 }
  0xd7   :  { %404 = vmatpush.msra.mxu2 %v373_v27 }
  0xd9   :  { %405 = vmatpush.msra.mxu2 %v372_v28 }
  0xdb   :  { %v138_v48 = vpop.f32.mrf.mxu0  ;;  %406 = vmatpush.msra.mxu2 %v371_v29 }
  0xdc   :  { %v139_v49 = vadd.f32 %v803_v35, %v138_v48 }
  0xe3   :  { %v141_v54 = vpop.f32.mrf.mxu0 }
  0xe4   :  { %v142_v55 = vadd.f32 %v803_v35, %v141_v54 }
  0xeb   :  { %v144_v61 = vpop.f32.mrf.mxu0 }
  0xec   :  { %v145_v62 = vadd.f32 %v803_v35, %v144_v61 }
  0xf3   :  { %v147_v3 = vpop.f32.mrf.mxu0 }
  0xf4   :  { %v148_v4 = vadd.f32 %v803_v35, %v147_v3 }
  0xfb   :  { %v150_v10 = vpop.f32.mrf.mxu0 }
  0xfc   :  { %v151_v21 = vadd.f32 %v803_v35, %v150_v10 }
 0x103   :  { %v153_v16 = vpop.f32.mrf.mxu0 }
 0x104   :  { %v154_v30 = vadd.f32 %v803_v35, %v153_v16 }
 0x13f   :  { %v220_v44 = vpop.f32.mrf.mxu2 }
 0x140   :  { %v225_v45 = vadd.f32 %v220_v44, %v136_v43 }
 0x142   :  { %443 = vtanh.f32 %v225_v45 }
 0x148   :  { %v444_v46 = vpop.eup %443 }
 0x149   :  { %243 = vmatmul.f32.vlgmr.msra.gmra.mxu3 %v444_v46 }
 0x1cc   :  { %v244_v50 = vpop.f32.mrf.mxu3 }
 0x1cd   :  { %v249_v51 = vadd.f32 %v244_v50, %v139_v49 }
 0x1cf   :  { %445 = vtanh.f32 %v249_v51 }
 0x1d5   :  { %v446_v52 = vpop.eup %445 }
 0x1d6   :  { %267 = vmatmul.f32.vlgmr.msrb.gmra.mxu1 %v446_v52 }
 0x253   :  { %v268_v56 = vpop.f32.mrf.mxu1 }
 0x254   :  { %v273_v57 = vadd.f32 %v268_v56, %v142_v55 }
 0x256   :  { %447 = vtanh.f32 %v273_v57 }
 0x25c   :  { %v448_v58 = vpop.eup %447 }
 0x25d   :  { %291 = vmatmul.f32.vlgmr.msrb.gmra.mxu2 %v448_v58 }
 0x2e0   :  { %v292_v63 = vpop.f32.mrf.mxu2 }
 0x2e1   :  { %v297_v0 = vadd.f32 %v292_v63, %v145_v62 }
 0x2e3   :  { %449 = vtanh.f32 %v297_v0 }
 0x2e9   :  { %v450_v1 = vpop.eup %449 }
 0x2ea   :  { %315 = vmatmul.f32.vlgmr.msrb.gmra.mxu3 %v450_v1 }
 0x36d   :  { %v316_v5 = vpop.f32.mrf.mxu3 }
 0x36e   :  { %v321_v6 = vadd.f32 %v316_v5, %v148_v4 }
 0x370   :  { %451 = vtanh.f32 %v321_v6 }
 0x376   :  { %v452_v7 = vpop.eup %451 }
 0x377   :  { %339 = vmatmul.f32.vlgmr.msrb.gmra.mxu0 %v452_v7 }
 0x3f4   :  { %v340_v22 = vpop.f32.mrf.mxu0 }
 0x3f5   :  { %v345_v23 = vadd.f32 %v340_v22, %v151_v21 }
 0x3f7   :  { %453 = vtanh.f32 %v345_v23 }
 0x3fd   :  { %v454_v24 = vpop.eup %453 }
 0x3fe   :  { %363 = vmatmul.f32.vlgmr.msra.gmra.mxu1 %v454_v24 }
 0x47b   :  { %v364_v31 = vpop.f32.mrf.mxu1 }
 0x47c   :  { %v369_v32 = vadd.f32 %v364_v31, %v154_v30 }
 0x47e   :  { %455 = vtanh.f32 %v369_v32 }
 0x484   :  { %v456_v33 = vpop.eup %455 }
 0x485   :  { %407 = vmatmul.f32.vlgmr.msra.gmra.mxu2 %v456_v33 }
 0x508   :  { %v408_v36 = vpop.f32.mrf.mxu2 }
 0x509   :  { %v409_v37 = vadd.f32 %v440_v34, %v408_v36 }
 0x50b   :  { %411 = vst [vmem:[#allocation11] sm:$0xff] %v409_v37 }
 0x50c   :  { %422 = dma.vmem_to_hbm [thread:$0]  %s418_s19, 128, %s420_s22, [#allocation5]  }
 0x50d   :  { %583 = dma.done.wait [#allocation5], 128  }
 0x50e   :  { %584 = vsyncadd [#allocation5], 4294967168 }
 0x50f   :  { %427 = vsyncpa [#allocation4], 1 }
 0x510   :  { %428 = vsyncpa [#allocation7], 1 }
 0x511   :  { %429 = vsyncpa [#allocation10], 1 }
 0x512   :  { %430 = vsyncpa [#allocation5], 1 }

</bundles_post_ra>
